<compile_context>
chip_gen: v7x
topology: tpu7x:2x2x1
jax: 0.10.0
libtpu: 0.0.40
codegen_flags: <defaults>
</compile_context>

<pallas_src>
import functools

import jax
import jax.numpy as jnp
from jax.experimental import pallas as pl
from jax.experimental.pallas import tpu as pltpu


EMB_DIM = 288          # per-embedding feature size (module hardcodes 2 * 288)
HIDDEN = 256
NUM_ACTIONS = 7
MAX_TM = 512           # row-tile cap (keeps >= 2 grid steps for medium batches)


def _idnet_kernel(s_ref, n_ref, w1a_ref, w1b_ref, b1_ref, w2_ref, b2_ref, o_ref):
    """Fused logits = relu([s, n] @ W1 + b1) @ W2 + b2 for one row tile.

    s_ref, n_ref : (TM, 288) bf16   state / next-state embedding rows
    w1a_ref      : (288, 256) bf16  top half of W1^T (state part)
    w1b_ref      : (288, 256) bf16  bottom half of W1^T (next-state part)
    b1_ref       : (1, 256)  f32
    w2_ref       : (256, A)  bf16
    b2_ref       : (1, A)    f32
    o_ref        : (TM, A)   f32
    """
    # Layer 1: two K=288 bf16 matmuls accumulated in f32 (concat never built).
    h = jnp.dot(s_ref[...], w1a_ref[...], preferred_element_type=jnp.float32)
    h = h + jnp.dot(n_ref[...], w1b_ref[...], preferred_element_type=jnp.float32)
    h = jnp.maximum(h + b1_ref[...], 0.0)            # bias + ReLU in f32 (VPU)
    # Layer 2: narrow-N matmul straight into the un-padded logits block.
    logits = jnp.dot(h.astype(jnp.bfloat16), w2_ref[...],
                     preferred_element_type=jnp.float32)
    o_ref[...] = (logits + b2_ref[...]).astype(o_ref.dtype)


def _round_up(x, m):
    return ((x + m - 1) // m) * m


def _choose_tile(m):
    """Row-tile size: full array for tiny M, else multiple of 16 (bf16 sublane
    packing) aiming for >= 8 grid steps so v7x's 2 TCs both get work."""
    if m <= 256:
        return m                                   # single block == full dims
    return min(MAX_TM, _round_up(-(-m // 8), 16))


@functools.partial(jax.jit, static_argnames=("num_actions",))
def inverse_dynamics_forward(state_emb, next_state_emb, params, *, num_actions):
    """state_emb, next_state_emb: (T, B, 288) -> (T, B, num_actions) float32."""
    T, B, D = state_emb.shape
    assert D == EMB_DIM
    M = T * B
    # bf16 rows for the kernel (upstream should ideally store bf16 directly so
    # this cast fuses with the producer instead of being a standalone pass).
    s2 = state_emb.reshape(M, D).astype(jnp.bfloat16)
    n2 = next_state_emb.reshape(M, D).astype(jnp.bfloat16)

    tm = _choose_tile(M)
    grid = (pl.cdiv(M, tm),)                       # ragged last tile, no jnp.pad

    w1a, w1b, b1, w2, b2 = (
        params["w1a"], params["w1b"], params["b1"], params["w2"], params["b2"]
    )

    row_spec = pl.BlockSpec((tm, EMB_DIM), lambda i: (i, 0))
    # Constant index_map -> weights stay VMEM-resident across grid steps.
    # TODO(synk): pipeline_mode=pl.Buffered(1) on these would save ~0.3 MiB of
    # double-buffered weight VMEM; skipped as negligible on all generations.
    const = lambda shape: pl.BlockSpec(shape, lambda i: (0, 0))

    flops = 2 * M * (2 * EMB_DIM * HIDDEN + HIDDEN * num_actions)
    bytes_accessed = (
        M * (2 * EMB_DIM * 2 + num_actions * 4)        # bf16 reads + f32 writes
        + 2 * EMB_DIM * HIDDEN * 2 + HIDDEN * 4        # W1 halves + b1
        + HIDDEN * num_actions * 2 + num_actions * 4   # W2 + b2
    )

    out = pl.pallas_call(
        _idnet_kernel,
        out_shape=jax.ShapeDtypeStruct((M, num_actions), jnp.float32),
        grid=grid,
        in_specs=[
            row_spec,                              # state rows      (bf16)
            row_spec,                              # next-state rows (bf16)
            const((EMB_DIM, HIDDEN)),              # w1a (bf16)
            const((EMB_DIM, HIDDEN)),              # w1b (bf16)
            const((1, HIDDEN)),                    # b1  (f32)
            const((HIDDEN, num_actions)),          # w2  (bf16)
            const((1, num_actions)),               # b2  (f32)
        ],
        out_specs=pl.BlockSpec((tm, num_actions), lambda i: (i, 0)),
        compiler_params=pltpu.CompilerParams(
            dimension_semantics=("parallel",),     # shards row tiles on v7x 2-TC
        ),
        cost_estimate=pl.CostEstimate(
            flops=flops, transcendentals=0, bytes_accessed=bytes_accessed),
    )(s2, n2, w1a, w1b, b1, w2, b2)

    return out.reshape(T, B, num_actions)


def _orthogonal(key, shape, gain=1.0, dtype=jnp.float32):
    """Deterministic equivalent of torch.nn.init.orthogonal_ for 2-D weights."""
    rows, cols = shape
    mat_shape = (rows, cols) if rows >= cols else (cols, rows)
    a = jax.random.normal(key, mat_shape, dtype)
    q, r = jnp.linalg.qr(a)
    q = q * jnp.sign(jnp.diag(r))                 # make decomposition unique
    if rows < cols:
        q = q.T
    return (gain * q).astype(dtype)


def make_params(key, num_actions):
    k1, k2 = jax.random.split(key)
    relu_gain = float(jnp.sqrt(2.0))              # nn.init.calculate_gain('relu')

    # Linear(2*288, 256): torch weight shape (256, 576); keep its transpose,
    # split into the state / next-state halves, store bf16 for native MXU rate.
    w1_t = _orthogonal(k1, (HIDDEN, 2 * EMB_DIM), gain=relu_gain).T   # (576, 256)
    w1a = w1_t[:EMB_DIM, :].astype(jnp.bfloat16)
    w1b = w1_t[EMB_DIM:, :].astype(jnp.bfloat16)
    b1 = jnp.zeros((1, HIDDEN), jnp.float32)

    # Linear(256, num_actions): torch weight shape (A, 256); transpose, bf16.
    w2_t = _orthogonal(k2, (num_actions, HIDDEN), gain=1.0).T         # (256, A)
    w2 = w2_t.astype(jnp.bfloat16)
    b2 = jnp.zeros((1, num_actions), jnp.float32)

    return {"w1a": w1a, "w1b": w1b, "b1": b1, "w2": w2, "b2": b2}


def _reference(state_emb, next_state_emb, params, num_actions):
    """Pure-JAX reference with the same bf16/f32-accumulation datapath."""
    T, B, _ = state_emb.shape
    x = jnp.concatenate([state_emb, next_state_emb], axis=2).reshape(T * B, -1)
    x = x.astype(jnp.bfloat16)
    w1 = jnp.concatenate([params["w1a"], params["w1b"]], axis=0)      # (576, 256)
    h = jnp.dot(x, w1, preferred_element_type=jnp.float32) + params["b1"]
    h = jnp.maximum(h, 0.0).astype(jnp.bfloat16)
    logits = jnp.dot(h, params["w2"], preferred_element_type=jnp.float32)
    logits = logits + params["b2"]
    return logits.reshape(T, B, num_actions)


if __name__ == "__main__":
    key = jax.random.PRNGKey(0)
    kp, ks, kn, ks2, kn2 = jax.random.split(key, 5)

    params = make_params(kp, NUM_ACTIONS)

    # Small shape: single full-array tile (M = 16).
    T, B = 8, 2
    state_emb = jax.random.normal(ks, (T, B, EMB_DIM), jnp.float32)
    next_state_emb = jax.random.normal(kn, (T, B, EMB_DIM), jnp.float32)
    logits = inverse_dynamics_forward(
        state_emb, next_state_emb, params, num_actions=NUM_ACTIONS
    )
    jax.block_until_ready(logits)
    assert logits.shape == (T, B, NUM_ACTIONS)
    ref = _reference(state_emb, next_state_emb, params, NUM_ACTIONS)
    assert jnp.allclose(logits, ref, atol=2e-2, rtol=2e-2)

    # Larger shape exercising the multi-step grid with a ragged last tile
    # (M = 1105 -> tm = 144, 8 grid steps, 97-row tail).
    T2, B2 = 65, 17
    s2 = jax.random.normal(ks2, (T2, B2, EMB_DIM), jnp.float32)
    n2 = jax.random.normal(kn2, (T2, B2, EMB_DIM), jnp.float32)
    logits2 = inverse_dynamics_forward(s2, n2, params, num_actions=NUM_ACTIONS)
    jax.block_until_ready(logits2)
    assert logits2.shape == (T2, B2, NUM_ACTIONS)
    ref2 = _reference(s2, n2, params, NUM_ACTIONS)
    assert jnp.allclose(logits2, ref2, atol=2e-2, rtol=2e-2)

    print("KERNEL_OK")
</pallas_src>

<mosaic_0001>
module attributes {stable_mosaic.version = 11 : i64} {
  func.func @_idnet_kernel(%arg0: i32, %arg1: memref<16x288xbf16, #tpu.memory_space<vmem>>, %arg2: memref<16x288xbf16, #tpu.memory_space<vmem>>, %arg3: memref<288x256xbf16, #tpu.memory_space<vmem>>, %arg4: memref<288x256xbf16, #tpu.memory_space<vmem>>, %arg5: memref<1x256xf32, #tpu.memory_space<vmem>>, %arg6: memref<256x7xbf16, #tpu.memory_space<vmem>>, %arg7: memref<1x7xf32, #tpu.memory_space<vmem>>, %arg8: memref<16x7xf32, #tpu.memory_space<vmem>>) attributes {dimension_semantics = [#tpu.dimension_semantics<parallel>], iteration_bounds = array<i64: 1>, scalar_prefetch = 0 : i64, scratch_operands = 0 : i64, tpu.core_type = #tpu.core_type<tc>, window_params = [{transform_indices = @transform_0, window_bounds = array<i64: 16, 288>}, {transform_indices = @transform_1, window_bounds = array<i64: 16, 288>}, {pipeline_mode = #tpu.pipeline_mode<synchronous>, transform_indices = @transform_2, window_bounds = array<i64: 288, 256>}, {pipeline_mode = #tpu.pipeline_mode<synchronous>, transform_indices = @transform_3, window_bounds = array<i64: 288, 256>}, {pipeline_mode = #tpu.pipeline_mode<synchronous>, transform_indices = @transform_4, window_bounds = array<i64: 1, 256>}, {pipeline_mode = #tpu.pipeline_mode<synchronous>, transform_indices = @transform_5, window_bounds = array<i64: 256, 7>}, {pipeline_mode = #tpu.pipeline_mode<synchronous>, transform_indices = @transform_6, window_bounds = array<i64: 1, 7>}, {transform_indices = @transform_7, window_bounds = array<i64: 16, 7>}]} {
    %c0 = arith.constant 0 : index
    %c0_0 = arith.constant 0 : index
    %0 = vector.load %arg1[%c0, %c0_0] : memref<16x288xbf16, #tpu.memory_space<vmem>>, vector<16x288xbf16>
    %c0_1 = arith.constant 0 : index
    %c0_2 = arith.constant 0 : index
    %1 = vector.load %arg3[%c0_1, %c0_2] : memref<288x256xbf16, #tpu.memory_space<vmem>>, vector<288x256xbf16>
    %cst = arith.constant dense<0.000000e+00> : vector<16x256xf32>
    %2 = tpu.matmul %0, %1, %cst {dimension_numbers = #tpu.dot_dimension_numbers<[1], [0], [0], [1], [0, 0, 1, 1], [], []>} : vector<16x288xbf16>, vector<288x256xbf16>, vector<16x256xf32> -> vector<16x256xf32>
    %c0_3 = arith.constant 0 : index
    %c0_4 = arith.constant 0 : index
    %3 = vector.load %arg2[%c0_3, %c0_4] : memref<16x288xbf16, #tpu.memory_space<vmem>>, vector<16x288xbf16>
    %c0_5 = arith.constant 0 : index
    %c0_6 = arith.constant 0 : index
    %4 = vector.load %arg4[%c0_5, %c0_6] : memref<288x256xbf16, #tpu.memory_space<vmem>>, vector<288x256xbf16>
    %cst_7 = arith.constant dense<0.000000e+00> : vector<16x256xf32>
    %5 = tpu.matmul %3, %4, %cst_7 {dimension_numbers = #tpu.dot_dimension_numbers<[1], [0], [0], [1], [0, 0, 1, 1], [], []>} : vector<16x288xbf16>, vector<288x256xbf16>, vector<16x256xf32> -> vector<16x256xf32>
    %6 = arith.addf %2, %5 : vector<16x256xf32>
    %c0_8 = arith.constant 0 : index
    %c0_9 = arith.constant 0 : index
    %7 = vector.load %arg5[%c0_8, %c0_9] : memref<1x256xf32, #tpu.memory_space<vmem>>, vector<1x256xf32>
    %8 = vector.broadcast %7 : vector<1x256xf32> to vector<16x256xf32>
    %9 = arith.addf %6, %8 : vector<16x256xf32>
    %cst_10 = arith.constant 0.000000e+00 : f32
    %10 = vector.broadcast %cst_10 : f32 to vector<16x256xf32>
    %11 = arith.maximumf %9, %10 : vector<16x256xf32>
    %12 = arith.truncf %11 : vector<16x256xf32> to vector<16x256xbf16>
    %c0_11 = arith.constant 0 : index
    %c0_12 = arith.constant 0 : index
    %13 = vector.load %arg6[%c0_11, %c0_12] : memref<256x7xbf16, #tpu.memory_space<vmem>>, vector<256x7xbf16>
    %cst_13 = arith.constant dense<0.000000e+00> : vector<16x7xf32>
    %14 = tpu.matmul %12, %13, %cst_13 {dimension_numbers = #tpu.dot_dimension_numbers<[1], [0], [0], [1], [0, 0, 1, 1], [], []>} : vector<16x256xbf16>, vector<256x7xbf16>, vector<16x7xf32> -> vector<16x7xf32>
    %c0_14 = arith.constant 0 : index
    %c0_15 = arith.constant 0 : index
    %15 = vector.load %arg7[%c0_14, %c0_15] : memref<1x7xf32, #tpu.memory_space<vmem>>, vector<1x7xf32>
    %16 = vector.broadcast %15 : vector<1x7xf32> to vector<16x7xf32>
    %17 = arith.addf %14, %16 : vector<16x7xf32>
    %c0_16 = arith.constant 0 : index
    %c0_17 = arith.constant 0 : index
    %18 = vector.load %arg8[%c0_16, %c0_17] : memref<16x7xf32, #tpu.memory_space<vmem>>, vector<16x7xf32>
    tpu.vector_store %arg8[%c0_16, %c0_17], %17 {strides = array<i32>} : memref<16x7xf32, #tpu.memory_space<vmem>>, vector<16x7xf32>,
    return
  }
  func.func @transform_0(%arg0: i32) -> (i32, i32) {
    %c0_i32 = arith.constant 0 : i32
    %c0_i32_0 = arith.constant 0 : i32
    return %arg0, %c0_i32 : i32, i32
  }
  func.func @transform_1(%arg0: i32) -> (i32, i32) {
    %c0_i32 = arith.constant 0 : i32
    %c0_i32_0 = arith.constant 0 : i32
    return %arg0, %c0_i32 : i32, i32
  }
  func.func @transform_2(%arg0: i32) -> (i32, i32) {
    %c0_i32 = arith.constant 0 : i32
    %c0_i32_0 = arith.constant 0 : i32
    %c0_i32_1 = arith.constant 0 : i32
    return %c0_i32, %c0_i32_0 : i32, i32
  }
  func.func @transform_3(%arg0: i32) -> (i32, i32) {
    %c0_i32 = arith.constant 0 : i32
    %c0_i32_0 = arith.constant 0 : i32
    %c0_i32_1 = arith.constant 0 : i32
    return %c0_i32, %c0_i32_0 : i32, i32
  }
  func.func @transform_4(%arg0: i32) -> (i32, i32) {
    %c0_i32 = arith.constant 0 : i32
    %c0_i32_0 = arith.constant 0 : i32
    %c0_i32_1 = arith.constant 0 : i32
    return %c0_i32, %c0_i32_0 : i32, i32
  }
  func.func @transform_5(%arg0: i32) -> (i32, i32) {
    %c0_i32 = arith.constant 0 : i32
    %c0_i32_0 = arith.constant 0 : i32
    %c0_i32_1 = arith.constant 0 : i32
    return %c0_i32, %c0_i32_0 : i32, i32
  }
  func.func @transform_6(%arg0: i32) -> (i32, i32) {
    %c0_i32 = arith.constant 0 : i32
    %c0_i32_0 = arith.constant 0 : i32
    %c0_i32_1 = arith.constant 0 : i32
    return %c0_i32, %c0_i32_0 : i32, i32
  }
  func.func @transform_7(%arg0: i32) -> (i32, i32) {
    %c0_i32 = arith.constant 0 : i32
    %c0_i32_0 = arith.constant 0 : i32
    return %arg0, %c0_i32 : i32, i32
  }
}

</mosaic_0001>

<bundles_post_ra>
// kernel: inverse_dynamics_forward.1
= control target key start
LH: loop header
LB: loop body
LE: loop exit
PB: predicated region body
PF: predicated region fallthrough
CT: control target
= control target key end

     0   :  { %12 = vsyncpa [#allocation3], 0  ;;  %s1187_s24 = smov [#allocation2]   ;;  %s1433_s0 = inlined_call_operand.vmem [shape: bf16[16,288], index: 0, kind: input, shape index: {}]   ;;  %s1434_s1 = inlined_call_operand.vmem [shape: bf16[16,288], index: 1, kind: input, shape index: {}]   ;;  %s1435_s2 = inlined_call_operand.vmem [shape: bf16[288,256], index: 2, kind: input, shape index: {}]   ;;  %s1436_s3 = inlined_call_operand.hbm [shape: bf16[288,256], index: 3, kind: input, shape index: {}]   ;;  %s1437_s4 = inlined_call_operand.vmem [shape: f32[1,256], index: 4, kind: input, shape index: {}]   ;;  %s1438_s5 = inlined_call_operand.vmem [shape: bf16[256,7], index: 5, kind: input, shape index: {}]   ;;  %s1439_s6 = inlined_call_operand.vmem [shape: f32[1,7], index: 6, kind: input, shape index: {}]   ;;  %s1440_s7 = inlined_call_operand.vmem [shape: f32[16,7], index: 7, kind: output, shape index: {}]  }
   0x1   :  { %s24_s25 = sshll.u32 %s1187_s24, 4  ;;  %s1163_s28 = scalar_lea.hbm %s1436_s3, 4608  ;;  %s25_s25 = int_to_ptr.vmem [resolvable:$true] %s24_s25 }
   0x2   :  { %p1164_p0 = scmp.ne.s32.totalorder %s1436_s3, %s1163_s28  ;;  %p1167_p1 = scmp.lt.u32.totalorder %s1163_s28, %s1436_s3 }
   0x4   :  { %p1169_p2 = pnand %p1167_p1, %p1164_p0 }
   0x6   :  { %1172 = shalt.err (!%p1169_p2)
}
   0x7   :  { %s1173_s10 = scalar_lea.vmem %s25_s25, 4608  ;;  %p1178_p4 = scmp.lt.s32.totalorder %s25_s25, %s25_s25 }
   0x8   :  { %p1174_p3 = scmp.ne.s32.totalorder %s25_s25, %s1173_s10  ;;  %p1179_p5 = scmp.lt.s32.totalorder %s1173_s10, %s1173_s10 }
   0xa   :  { %p1180_p6 = por %p1179_p5, %p1178_p4 }
   0xc   :  { %p1181_p7 = pnand %p1180_p6, %p1174_p3 }
   0xe   :  { %1184 = shalt.err (!%p1181_p7)
}
   0xf   :  { %s1188_s11 = smov 128   ;;  %s1189_s12 = smov 8  }
  0x10   :  { %30 = dma.hbm_to_vmem [thread:$0]  %s1436_s3, 4608, %s25_s25, [#allocation3], %s1188_s11, %s1188_s11, %s1189_s12  }
  0x11   :  { %1185 = dma.done.wait [#allocation3], 4608  }
  0x12   :  { %1186 = vsyncadd [#allocation3], 4294962688  ;;  %v1190_v0 = vmov 0   ;;  %v1031_v1 = vld [vmem:[#allocation2 + $0x104] ss:$8 sps:$4 sm:$0xff]   ;;  %vm316_vm0 = vcmask 261120  }
  0x13   :  { %395 = vmatprep.mubr.bf16.mxu0 %v1190_v0  ;;  %v1033_v2 = vld [vmem:[#allocation2 + $0x100] ss:$8 sps:$4 sm:$0xff]   ;;  %363 = vmatprep.subr.bf16.mxu0 %v1031_v1  ;;  %v1034_v3 = vld [vmem:[#allocation2 + $0x114] ss:$8 sps:$4 sm:$0xff]   ;;  %v1036_v4 = vld [vmem:[#allocation2 + $0x110] ss:$8 sps:$4 sm:$0xff]  }
  0x14   :  { %364 = vmatpush1.bf16.msra.mxu0 %v1033_v2  ;;  %v1039_v5 = vld [vmem:[%s1435_s2 + $0x4] ss:$8 sps:$4 sm:$0xff]   ;;  %v1040_v6 = vld [vmem:[%s1434_s1 + $0x8] ss:$12 sps:$4 sm:$0xff]   ;;  %v1041_v11 = vld [vmem:[%s1435_s2 + $0x10] ss:$8 sps:$4 sm:$0xff]  }
  0x15   :  { %365 = vmatprep.subr.bf16.mxu0 %v1034_v3  ;;  %v1037_v7 = vld [vmem:[%s1435_s2] ss:$8 sps:$4 sm:$0xff]   ;;  %v1043_v8 = vld [vmem:[%s1435_s2 + $0x14] ss:$8 sps:$4 sm:$0xff]   ;;  %v1047_v9 = vld [vmem:[#allocation2 + $0x4] ss:$8 sps:$4 sm:$0xff]  }
  0x16   :  { %v1049_v10 = vld [vmem:[#allocation2] ss:$8 sps:$4 sm:$0xff]   ;;  %320 = vmatprep.subr.bf16.mxu1 %v1047_v9  ;;  %v1053_v12 = vld [vmem:[#allocation2 + $0x14] ss:$8 sps:$4 sm:$0xff]   ;;  %v1055_v13 = vld [vmem:[#allocation2 + $0x10] ss:$8 sps:$4 sm:$0xff]  }
  0x17   :  { %321 = vmatpush1.bf16.msra.mxu1 %v1049_v10  ;;  %v1046_v14 = vld [vmem:[%s1435_s2 + $0x24] ss:$8 sps:$4 sm:$0xff]   ;;  %v1044_v16 = vld [vmem:[%s1435_s2 + $0x20] ss:$8 sps:$4 sm:$0xff]   ;;  %v1052_v18 = vld [vmem:[%s1435_s2 + $0x34] ss:$8 sps:$4 sm:$0xff]  }
  0x18   :  { %366 = vmatpush1.bf16.msra.mxu0 %v1036_v4  ;;  %322 = vmatprep.subr.bf16.mxu1 %v1053_v12  ;;  %v1059_v15 = vld [vmem:[#allocation2 + $0x24] ss:$8 sps:$4 sm:$0xff]   ;;  %v1061_v17 = vld [vmem:[#allocation2 + $0x20] ss:$8 sps:$4 sm:$0xff]   ;;  %v1065_v19 = vld [vmem:[#allocation2 + $0x34] ss:$8 sps:$4 sm:$0xff]  }
  0x19   :  { %604 = vmatprep.subr.bf16.mxu0 %v1039_v5  ;;  %v1050_v20 = vld [vmem:[%s1435_s2 + $0x30] ss:$8 sps:$4 sm:$0xff]   ;;  %v1058_v22 = vld [vmem:[%s1435_s2 + $0x44] ss:$8 sps:$4 sm:$0xff]   ;;  %v1056_v24 = vld [vmem:[%s1435_s2 + $0x40] ss:$8 sps:$4 sm:$0xff]  }
  0x1a   :  { %v1067_v21 = vld [vmem:[#allocation2 + $0x30] ss:$8 sps:$4 sm:$0xff]   ;;  %v1071_v23 = vld [vmem:[#allocation2 + $0x44] ss:$8 sps:$4 sm:$0xff]   ;;  %v1073_v25 = vld [vmem:[#allocation2 + $0x40] ss:$8 sps:$4 sm:$0xff]  }
  0x1b   :  { %935 = vmatmul.mubr.msk.bf16.vlgmr.msra.gmra.mrb[0].mxu0 %vm316_vm0, %v1040_v6  ;;  %323 = vmatpush1.bf16.msra.mxu1 %v1055_v13  ;;  %v1064_v26 = vld [vmem:[%s1435_s2 + $0x54] ss:$8 sps:$4 sm:$0xff]   ;;  %v1062_v28 = vld [vmem:[%s1435_s2 + $0x50] ss:$8 sps:$4 sm:$0xff]   ;;  %v1070_v30 = vld [vmem:[%s1435_s2 + $0x64] ss:$8 sps:$4 sm:$0xff]  }
  0x1c   :  { %605 = vmatpush1.bf16.msra.mxu0 %v1037_v7  ;;  %324 = vmatprep.subr.bf16.mxu1 %v1059_v15  ;;  %v1077_v27 = vld [vmem:[#allocation2 + $0x54] ss:$8 sps:$4 sm:$0xff]   ;;  %v1079_v29 = vld [vmem:[#allocation2 + $0x50] ss:$8 sps:$4 sm:$0xff]   ;;  %v1083_v31 = vld [vmem:[#allocation2 + $0x64] ss:$8 sps:$4 sm:$0xff]  }
  0x1d   :  { %606 = vmatprep.subr.bf16.mxu0 %v1043_v8  ;;  %v1068_v32 = vld [vmem:[%s1435_s2 + $0x60] ss:$8 sps:$4 sm:$0xff]   ;;  %v1076_v34 = vld [vmem:[%s1435_s2 + $0x74] ss:$8 sps:$4 sm:$0xff]   ;;  %v1074_v36 = vld [vmem:[%s1435_s2 + $0x70] ss:$8 sps:$4 sm:$0xff]  }
  0x1e   :  { %v1085_v33 = vld [vmem:[#allocation2 + $0x60] ss:$8 sps:$4 sm:$0xff]   ;;  %v1089_v35 = vld [vmem:[#allocation2 + $0x74] ss:$8 sps:$4 sm:$0xff]   ;;  %v1091_v37 = vld [vmem:[#allocation2 + $0x70] ss:$8 sps:$4 sm:$0xff]  }
  0x1f   :  { %325 = vmatpush1.bf16.msra.mxu1 %v1061_v17  ;;  %v1082_v38 = vld [vmem:[%s1435_s2 + $0x84] ss:$8 sps:$4 sm:$0xff]   ;;  %v1080_v40 = vld [vmem:[%s1435_s2 + $0x80] ss:$8 sps:$4 sm:$0xff]   ;;  %v1088_v42 = vld [vmem:[%s1435_s2 + $0x94] ss:$8 sps:$4 sm:$0xff]  }
  0x20   :  { %607 = vmatpush1.bf16.msra.mxu0 %v1041_v11  ;;  %326 = vmatprep.subr.bf16.mxu1 %v1065_v19  ;;  %v1095_v39 = vld [vmem:[#allocation2 + $0x84] ss:$8 sps:$4 sm:$0xff]   ;;  %v1097_v41 = vld [vmem:[#allocation2 + $0x80] ss:$8 sps:$4 sm:$0xff]   ;;  %v1101_v43 = vld [vmem:[#allocation2 + $0x94] ss:$8 sps:$4 sm:$0xff]  }
  0x21   :  { %608 = vmatprep.subr.bf16.mxu0 %v1046_v14  ;;  %v1086_v44 = vld [vmem:[%s1435_s2 + $0x90] ss:$8 sps:$4 sm:$0xff]   ;;  %v1094_v45 = vld [vmem:[%s1435_s2 + $0xa4] ss:$8 sps:$4 sm:$0xff]   ;;  %v1092_v49 = vld [vmem:[%s1435_s2 + $0xa0] ss:$8 sps:$4 sm:$0xff]  }
  0x22   :  { %v1103_v46 = vld [vmem:[#allocation2 + $0x90] ss:$8 sps:$4 sm:$0xff]   ;;  %v1107_v47 = vld [vmem:[#allocation2 + $0xa4] ss:$8 sps:$4 sm:$0xff]   ;;  %v1100_v50 = vld [vmem:[%s1435_s2 + $0xb4] ss:$8 sps:$4 sm:$0xff]  }
  0x23   :  { %327 = vmatpush1.bf16.msra.mxu1 %v1067_v21  ;;  %v1130_v48 = vld [vmem:[%s1433_s0 + $0x4] ss:$12 sps:$4 sm:$0xff]   ;;  %v1109_v51 = vld [vmem:[#allocation2 + $0xa0] ss:$8 sps:$4 sm:$0xff]   ;;  %v1113_v52 = vld [vmem:[#allocation2 + $0xb4] ss:$8 sps:$4 sm:$0xff]  }
  0x24   :  { %609 = vmatpush1.bf16.msra.mxu0 %v1044_v16  ;;  %328 = vmatprep.subr.bf16.mxu1 %v1071_v23  ;;  %v1098_v53 = vld [vmem:[%s1435_s2 + $0xb0] ss:$8 sps:$4 sm:$0xff]   ;;  %v1106_v54 = vld [vmem:[%s1435_s2 + $0xc4] ss:$8 sps:$4 sm:$0xff]   ;;  %v1104_v58 = vld [vmem:[%s1435_s2 + $0xc0] ss:$8 sps:$4 sm:$0xff]  }
  0x25   :  { %610 = vmatprep.subr.bf16.mxu0 %v1052_v18  ;;  %636 = vmatprep.mubr.bf16.mxu0 %v1130_v48  ;;  %v1115_v55 = vld [vmem:[#allocation2 + $0xb0] ss:$8 sps:$4 sm:$0xff]   ;;  %v1119_v57 = vld [vmem:[#allocation2 + $0xc4] ss:$8 sps:$4 sm:$0xff]   ;;  %v1112_v59 = vld [vmem:[%s1435_s2 + $0xd4] ss:$8 sps:$4 sm:$0xff]  }
  0x26   :  { %v1145_v56 = vld [vmem:[%s1434_s1 + $0x4] ss:$12 sps:$4 sm:$0xff]   ;;  %v1121_v60 = vld [vmem:[#allocation2 + $0xc0] ss:$8 sps:$4 sm:$0xff]   ;;  %v1125_v61 = vld [vmem:[#allocation2 + $0xd4] ss:$8 sps:$4 sm:$0xff]  }
  0x27   :  { %329 = vmatpush1.bf16.msra.mxu1 %v1073_v25  ;;  %352 = vmatprep.mubr.bf16.mxu1 %v1145_v56  ;;  %v1110_v62 = vld [vmem:[%s1435_s2 + $0xd0] ss:$8 sps:$4 sm:$0xff]   ;;  %v1118_v63 = vld [vmem:[%s1435_s2 + $0xe4] ss:$8 sps:$4 sm:$0xff]   ;;  %v1116_v3 = vld [vmem:[%s1435_s2 + $0xe0] ss:$8 sps:$4 sm:$0xff]  }
  0x28   :  { %611 = vmatpush1.bf16.msra.mxu0 %v1050_v20  ;;  %330 = vmatprep.subr.bf16.mxu1 %v1077_v27  ;;  %v1127_v1 = vld [vmem:[#allocation2 + $0xd0] ss:$8 sps:$4 sm:$0xff]   ;;  %v1134_v2 = vld [vmem:[#allocation2 + $0xe4] ss:$8 sps:$4 sm:$0xff]   ;;  %v1136_v4 = vld [vmem:[#allocation2 + $0xe0] ss:$8 sps:$4 sm:$0xff]  }
  0x29   :  { %612 = vmatprep.subr.bf16.mxu0 %v1058_v22  ;;  %v1124_v5 = vld [vmem:[%s1435_s2 + $0xf4] ss:$8 sps:$4 sm:$0xff]   ;;  %v1122_v7 = vld [vmem:[%s1435_s2 + $0xf0] ss:$8 sps:$4 sm:$0xff]   ;;  %v1133_v9 = vld [vmem:[%s1435_s2 + $0x104] ss:$8 sps:$4 sm:$0xff]  }
  0x2a   :  { %v1137_v6 = vld [vmem:[#allocation2 + $0xf4] ss:$8 sps:$4 sm:$0xff]   ;;  %v1142_v8 = vld [vmem:[#allocation2 + $0xf0] ss:$8 sps:$4 sm:$0xff]   ;;  %v1147_v10 = vld [vmem:[%s1438_s5 + $0x40] sm:$0xff]   ;;  %vm888_vm1 = vcmask 56320  }
  0x2b   :  { %331 = vmatpush1.bf16.msra.mxu1 %v1079_v29  ;;  %v1128_v11 = vld [vmem:[%s1433_s0] ss:$12 sps:$4 sm:$0xff]   ;;  %v1141_v14 = vld [vmem:[%s1435_s2 + $0x114] ss:$8 sps:$4 sm:$0xff]   ;;  %v1139_v17 = vld [vmem:[%s1435_s2 + $0x110] ss:$8 sps:$4 sm:$0xff]  }
  0x2c   :  { %613 = vmatpush1.bf16.msra.mxu0 %v1056_v24  ;;  %332 = vmatprep.subr.bf16.mxu1 %v1083_v31  ;;  %v1143_v12 = vld [vmem:[%s1434_s1] ss:$12 sps:$4 sm:$0xff]   ;;  %v1151_v19 = vld [vmem:[%s1438_s5 + $0x50] sm:$0xff]   ;;  %v1154_v22 = vld [vmem:[%s1438_s5 + $0x18] sm:$0xff]   ;;  %v692_v31 = vlaneseq }
  0x2d   :  { %614 = vmatprep.subr.bf16.mxu0 %v1064_v26  ;;  %v1131_v13 = vld [vmem:[%s1435_s2 + $0x100] ss:$8 sps:$4 sm:$0xff]   ;;  %v1152_v20 = vld [vmem:[%s1438_s5 + $0x10] sm:$0xff]   ;;  %v1161_v29 = vld [vmem:[%s1438_s5 + $0x78] sm:$0xff]  }
  0x2e   :  { %v1148_v15 = vld [vmem:[%s1438_s5] sm:$0xff]   ;;  %v1149_v16 = vld [vmem:[%s1438_s5 + $0x48] sm:$0xff]   ;;  %v1159_v27 = vld [vmem:[%s1438_s5 + $0x70] sm:$0xff]  }
  0x2f   :  { %333 = vmatpush1.bf16.msra.mxu1 %v1085_v33  ;;  %v1150_v18 = vld [vmem:[%s1438_s5 + $0x8] sm:$0xff]   ;;  %v1155_v23 = vld [vmem:[%s1438_s5 + $0x60] sm:$0xff]  }
  0x30   :  { %615 = vmatpush1.bf16.msra.mxu0 %v1062_v28  ;;  %334 = vmatprep.subr.bf16.mxu1 %v1089_v35  ;;  %v1146_v21 = vld [vmem:[%s1433_s0 + $0x8] ss:$12 sps:$4 sm:$0xff]   ;;  %v1156_v24 = vld [vmem:[%s1438_s5 + $0x20] sm:$0xff]   ;;  %v693_v35 = vshrl.u32 %v692_v31, 7 }
  0x31   :  { %616 = vmatprep.subr.bf16.mxu0 %v1070_v30  ;;  %v1157_v25 = vld [vmem:[%s1438_s5 + $0x68] sm:$0xff]   ;;  %v1160_v28 = vld [vmem:[%s1438_s5 + $0x30] sm:$0xff]   ;;  %v1162_v30 = vld [vmem:[%s1438_s5 + $0x38] sm:$0xff]  }
  0x32   :  { %v1158_v26 = vld [vmem:[%s1438_s5 + $0x28] sm:$0xff]  }
  0x33   :  { %335 = vmatpush1.bf16.msra.mxu1 %v1091_v37  ;;  %v694_v37 = vsub.s32 0, %v693_v35 }
  0x34   :  { %617 = vmatpush1.bf16.msra.mxu0 %v1068_v32  ;;  %336 = vmatprep.subr.bf16.mxu1 %v1095_v39  ;;  %v698_v39 = vsub.s32 1, %v693_v35 }
  0x35   :  { %618 = vmatprep.subr.bf16.mxu0 %v1076_v34 }
  0x37   :  { %337 = vmatpush1.bf16.msra.mxu1 %v1097_v41 }
  0x38   :  { %619 = vmatpush1.bf16.msra.mxu0 %v1074_v36  ;;  %338 = vmatprep.subr.bf16.mxu1 %v1101_v43 }
  0x39   :  { %620 = vmatprep.subr.bf16.mxu0 %v1082_v38  ;;  %v690_v38 = vld [vmem:[%s1437_s4] sm:$0x3] }
  0x3b   :  { %339 = vmatpush1.bf16.msra.mxu1 %v1103_v46 }
  0x3c   :  { %621 = vmatpush1.bf16.msra.mxu0 %v1080_v40  ;;  %340 = vmatprep.subr.bf16.mxu1 %v1107_v47  ;;  %v695_v40 = vrot.slane %v690_v38, %v694_v37 }
  0x3d   :  { %622 = vmatprep.subr.bf16.mxu0 %v1088_v42  ;;  %v699_v42 = vrot.slane %v690_v38, %v698_v39 }
  0x3f   :  { %341 = vmatpush1.bf16.msra.mxu1 %v1109_v51 }
  0x40   :  { %623 = vmatpush1.bf16.msra.mxu0 %v1086_v44  ;;  %342 = vmatprep.subr.bf16.mxu1 %v1113_v52 }
  0x41   :  { %624 = vmatprep.subr.bf16.mxu0 %v1094_v45 }
  0x43   :  { %343 = vmatpush1.bf16.msra.mxu1 %v1115_v55 }
  0x44   :  { %625 = vmatpush1.bf16.msra.mxu0 %v1092_v49  ;;  %344 = vmatprep.subr.bf16.mxu1 %v1119_v57 }
  0x45   :  { %626 = vmatprep.subr.bf16.mxu0 %v1100_v50 }
  0x47   :  { %345 = vmatpush1.bf16.msra.mxu1 %v1121_v60 }
  0x48   :  { %627 = vmatpush1.bf16.msra.mxu0 %v1098_v53  ;;  %346 = vmatprep.subr.bf16.mxu1 %v1125_v61  ;;  %v976_v61 = vld [vmem:[%s1439_s6] ss:$0 sm:$0xff] }
  0x49   :  { %628 = vmatprep.subr.bf16.mxu0 %v1106_v54 }
  0x4b   :  { %347 = vmatpush1.bf16.msra.mxu1 %v1127_v1 }
  0x4c   :  { %629 = vmatpush1.bf16.msra.mxu0 %v1104_v58  ;;  %348 = vmatprep.subr.bf16.mxu1 %v1134_v2 }
  0x4d   :  { %630 = vmatprep.subr.bf16.mxu0 %v1112_v59 }
  0x4f   :  { %349 = vmatpush1.bf16.msra.mxu1 %v1136_v4 }
  0x50   :  { %631 = vmatpush1.bf16.msra.mxu0 %v1110_v62  ;;  %350 = vmatprep.subr.bf16.mxu1 %v1137_v6 }
  0x51   :  { %632 = vmatprep.subr.bf16.mxu0 %v1118_v63 }
  0x53   :  { %351 = vmatpush1.bf16.msra.mxu1 %v1142_v8 }
  0x54   :  { %633 = vmatpush1.bf16.msra.mxu0 %v1116_v3  ;;  %993 = vmatprep.subr.bf16.mxu1 %v1147_v10 }
  0x55   :  { %634 = vmatprep.subr.bf16.mxu0 %v1124_v5 }
  0x56   :  { %353 = vmatmul.mubr.bf16.vlgmr.msra.gmra.mrb[0].mxu1 %v1143_v12 }
  0x57   :  { %994 = vmatpush3.bf16.msra.mxu1 %v1148_v15 }
  0x58   :  { %635 = vmatpush1.bf16.msra.mxu0 %v1122_v7  ;;  %995 = vmatprep.subr.bf16.mxu1 %v1149_v16 }
  0x59   :  { %647 = vmatprep.subr.bf16.mxu0 %v1133_v9 }
  0x5b   :  { %637 = vmatmul.mubr.bf16.vlgmr.msra.gmra.mrb[0].mxu0 %v1128_v11  ;;  %996 = vmatpush3.bf16.msra.mxu1 %v1150_v18 }
  0x5c   :  { %648 = vmatpush1.bf16.msra.mxu0 %v1131_v13  ;;  %679 = vmatprep.mubr.bf16.mxu0 %v1190_v0  ;;  %v1153_v0 = vld [vmem:[%s1438_s5 + $0x58] sm:$0xff]  }
  0x5d   :  { %649 = vmatprep.subr.bf16.mxu0 %v1141_v14  ;;  %997 = vmatprep.subr.bf16.mxu1 %v1151_v19 }
  0x5f   :  { %998 = vmatpush3.bf16.msra.mxu1 %v1152_v20 }
  0x60   :  { %650 = vmatpush1.bf16.msra.mxu0 %v1139_v17  ;;  %999 = vmatprep.subr.bf16.mxu1 %v1153_v0 }
  0x63   :  { %1000 = vmatpush3.bf16.msra.mxu1 %v1154_v22 }
  0x64   :  { %1001 = vmatprep.subr.bf16.mxu1 %v1155_v23 }
  0x67   :  { %975 = vmatmul.mubr.msk.bf16.vlgmr.msra.gmra.mrb[0].mxu0 %vm316_vm0, %v1146_v21  ;;  %1002 = vmatpush3.bf16.msra.mxu1 %v1156_v24 }
  0x68   :  { %1003 = vmatprep.subr.bf16.mxu1 %v1157_v25 }
  0x6b   :  { %1004 = vmatpush3.bf16.msra.mxu1 %v1158_v26 }
  0x6c   :  { %1005 = vmatprep.subr.bf16.mxu1 %v1159_v27 }
  0x6f   :  { %1006 = vmatpush3.bf16.msra.mxu1 %v1160_v28 }
  0x70   :  { %1007 = vmatprep.subr.bf16.mxu1 %v1161_v29 }
  0x73   :  { %1008 = vmatpush3.bf16.msra.mxu1 %v1162_v30 }
 0x129   :  { %v354_v32 = vpop.f32.mrb[0].mxu1 }
 0x12a   :  { %v356_v33 = vpop.f32.mrb[1].mxu1 }
 0x12b   :  { %v358_v34 = vpop.f32.mrb[2].mxu1 }
 0x12c   :  { %v360_v36 = vpop.f32.mrb[3].mxu1 }
 0x13a   :  { %v681_v41 = vpop.f32.mrb[0].mxu0 }
 0x13b   :  { %v1015_v43 = vadd.f32 %v681_v41, %v354_v32  ;;  %v683_v44 = vpop.f32.mrb[1].mxu0 }
 0x13c   :  { %v1016_v45 = vadd.f32 %v683_v44, %v356_v33  ;;  %v685_v46 = vpop.f32.mrb[2].mxu0 }
 0x13d   :  { %v702_v47 = vadd.f32 %v1015_v43, %v695_v40  ;;  %v1017_v48 = vadd.f32 %v685_v46, %v358_v34  ;;  %v687_v49 = vpop.f32.mrb[3].mxu0 }
 0x13e   :  { %v703_v50 = vadd.f32 %v1016_v45, %v699_v42  ;;  %v1018_v51 = vadd.f32 %v687_v49, %v360_v36 }
 0x13f   :  { %v704_v52 = vadd.f32 %v1017_v48, %v695_v40  ;;  %v706_v54 = vmax.f32 %v702_v47, 0.0 }
 0x140   :  { %v705_v53 = vadd.f32 %v1018_v51, %v699_v42  ;;  %v707_v56 = vmax.f32 %v703_v50, 0.0 }
 0x141   :  { %v708_v55 = vmax.f32 %v704_v52, 0.0 }
 0x142   :  { %v709_v57 = vmax.f32 %v705_v53, 0.0 }
 0x143   :  { %v710_v58 = vpack.c.bf16 %v708_v55, %v706_v54 }
 0x144   :  { %v711_v59 = vpack.c.bf16 %v709_v57, %v707_v56 }
 0x146   :  { %879 = vmatprep.mubr.bf16.mxu1 %v711_v59 }
 0x147   :  { %880 = vmatmul.mubr.bf16.vlgmr.msra.gmra.mrb[4].mxu1 %v710_v58 }
 0x21a   :  { %v1009_v60 = vpop.f32.mrb[4].mxu1 }
 0x21b   :  { %v1010_v62 = vpop.f32.mrb[5].mxu1 }
 0x21c   :  { %v1011_v63 = vadd.f32 %v1010_v62, %v1009_v60  ;;  %v1012_v1 = vpop.f32.mrb[6].mxu1 }
 0x21d   :  { %v1013_v2 = vpop.f32.mrb[7].mxu1 }
 0x21e   :  { %v882_v3 = vadd.f32 %v1011_v63, %v976_v61  ;;  %v1014_v4 = vadd.f32 %v1013_v2, %v1012_v1 }
 0x220   :  { %889 = vst.msk [vmem:[%s1440_s7] sm:$0xff] %vm888_vm1, %v882_v3  ;;  %v885_v5 = vadd.f32 %v1014_v4, %v976_v61 }
 0x222   :  { %890 = vst.msk [vmem:[%s1440_s7 + $0x8] sm:$0xff] %vm888_vm1, %v885_v5 }
 0x223   :  { %895 = vsyncpa [#allocation3], 1 }

</bundles_post_ra>
